<compile_context>
chip_gen: v7x
topology: tpu7x:2x2x1
jax: 0.10.0
libtpu: 0.0.40
codegen_flags: <defaults>
</compile_context>

<pallas_src>
import functools

import jax
import jax.numpy as jnp
from jax.experimental import pallas as pl
from jax.experimental.pallas import tpu as pltpu

SELU_ALPHA = 1.6732632423543772848170429916717
SELU_SCALE = 1.0507009873554804934193349852946


def _dcrnn_kernel(x_ref, p_ref, wx_ref, wdk_ref, bg_ref, wl_ref, bl_ref,
                  out_ref, state_ref, gacc_ref, *, hidden, tile_j):
    """One (direction d, Chebyshev order m = kk+1, node-column tile j) grid step.

    Channel-major layout (nodes on lanes):
      x_ref     : [F, N_pad]     bf16  X^T (resident)
      p_ref     : [N_pad, TJ]    bf16  column block j of P_d^T
      wx_ref    : [2H, F]        bf16  order-0 gate weights (both dirs summed), gate-fused (Z|H~)
      wdk_ref   : [2H, F]        bf16  gate weights for (direction d, order kk+1)
      bg_ref    : [2H, 1]        f32   fused gate bias (b_z | b_h)
      wl_ref    : [O, H]         bf16  final Linear weight (transposed)
      bl_ref    : [O, 1]         f32   final Linear bias
      out_ref   : [O, TJ]        f32   output column block j
      state_ref : [2, F, N_pad]  f32   resident Chebyshev state (T_{m-1}, T_{m-2})
      gacc_ref  : [2H, N_pad]    f32   resident accumulated gate pre-activations
    """
    d = pl.program_id(0)
    kk = pl.program_id(1)              # computing Chebyshev order m = kk + 1
    j = pl.program_id(2)
    m = kk + 1
    col = pl.ds(pl.multiple_of(j * tile_j, tile_j), tile_j)

    # Start of each direction: (re)seed T_0 = X^T into slot 0, clear slot 1.
    @pl.when((kk == 0) & (j == 0))
    def _():
        state_ref[0] = x_ref[...].astype(jnp.float32)
        state_ref[1] = jnp.zeros(x_ref.shape, jnp.float32)

    src = kk % 2              # slot holding T_{m-1} (full width)
    dst = (kk + 1) % 2        # slot receiving T_m   (holds T_{m-2} for m >= 2)

    # Diffusion step for this column block (contraction over all N_pad nodes):
    #   T_1^T[:, j] =     T_0^T     @ P^T[:, j]
    #   T_m^T[:, j] = 2 * T_{m-1}^T @ P^T[:, j] - T_{m-2}^T[:, j]   (m >= 2)
    left = state_ref[src].astype(jnp.bfloat16)                               # [F, N_pad]
    prod = jnp.dot(left, p_ref[...], preferred_element_type=jnp.float32)     # [F, TJ]
    prev2 = state_ref[dst, :, col]                                           # [F, TJ]
    t_new = jnp.where(m == 1, prod, 2.0 * prod - prev2)
    state_ref[dst, :, col] = t_new

    # Gate accumulation: G^T[:, j] = sum_{d,m} W_{d,m}^T @ T_{d,m}^T[:, j].
    # Order-0 (X) contribution initializes the accumulator on the first visit.
    @pl.when((d == 0) & (kk == 0))
    def _():
        gacc_ref[:, col] = jnp.dot(wx_ref[...], x_ref[:, col],
                                   preferred_element_type=jnp.float32)

    gacc_ref[:, col] += jnp.dot(wdk_ref[...], t_new.astype(jnp.bfloat16),
                                preferred_element_type=jnp.float32)

    # Epilogue on the last (direction, order) visit of this column block:
    # GRU gates (H0 == 0  =>  R gate dead, H_new = (1-Z)*H~), SELU, Linear.
    @pl.when((d == pl.num_programs(0) - 1) & (kk == pl.num_programs(1) - 1))
    def _():
        G = gacc_ref[:, col] + bg_ref[...]                  # [2H, TJ]
        Z = jax.nn.sigmoid(G[:hidden])
        Ht = jnp.tanh(G[hidden:])
        Hn = (1.0 - Z) * Ht
        s = SELU_SCALE * jnp.where(Hn > 0, Hn, SELU_ALPHA * (jnp.exp(Hn) - 1.0))
        out_ref[...] = (jnp.dot(wl_ref[...], s.astype(jnp.bfloat16),
                                preferred_element_type=jnp.float32) + bl_ref[...])


def _vmem_capacity_bytes():
    try:
        info = pltpu.get_tpu_info()
        cap = getattr(info, "vmem_capacity_bytes", None)
        if cap:
            return int(cap)
    except Exception:
        pass
    return 64 * 1024 * 1024   # conservative: v7x per-TensorCore VMEM


def _kernel_vmem_bytes(n_pad, tile_j, F, Hd, O, K):
    p_blk = 2 * n_pad * tile_j * 2                                    # double-buffered P^T block (bf16)
    x_buf = 2 * F * n_pad * 2
    w_buf = 2 * (2 * Hd * F * 2 * 2 + 2 * Hd * 4 + O * Hd * 2 + O * 4)
    out_buf = 2 * O * tile_j * 4
    scratch = 2 * F * n_pad * 4 + 2 * Hd * n_pad * 4                  # Chebyshev state + gate acc
    return p_blk + x_buf + w_buf + out_buf + scratch


@functools.partial(jax.jit, static_argnames=("K", "n_pad", "tile_j", "vmem_limit"))
def _recurrent_gcn_impl(x, edge_index, edge_weight, params, *, K, n_pad, tile_j, vmem_limit):
    N, F = x.shape
    Hd = params["b_z"].shape[-1]
    O = params["b_lin"].shape[-1]

    # ---- graph densification & transposed diffusion operators (fused under this jit) ----
    # Sparse scatter has no rectangular-tile Pallas equivalent -> JAX glue.
    A = jnp.zeros((n_pad, n_pad), jnp.float32).at[edge_index[0], edge_index[1]].add(edge_weight)
    deg_out = A.sum(axis=1)
    deg_in = A.sum(axis=0)
    inv_out = 1.0 / jnp.where(deg_out > 0, deg_out, 1.0)   # isolated / padded nodes -> zero rows
    inv_in = 1.0 / jnp.where(deg_in > 0, deg_in, 1.0)
    # P_out = D_out^{-1} A, P_in = D_in^{-1} A^T ; kernel consumes their transposes, stacked.
    p_t = jnp.stack([A.T * inv_out[None, :], A * inv_in[None, :]]).astype(jnp.bfloat16)

    x_t = jnp.zeros((F, n_pad), jnp.float32).at[:, :N].set(x.T).astype(jnp.bfloat16)

    # ---- H0 == 0 gate-weight specialization (only X-side columns, R gate dead) ----
    Wz = params["W_z"][:, :, :F, :]                          # [2, K, F, Hd]
    Wh = params["W_h"][:, :, :F, :]
    wx = jnp.concatenate([(Wz[0, 0] + Wz[1, 0]).T,
                          (Wh[0, 0] + Wh[1, 0]).T], axis=0).astype(jnp.bfloat16)      # [2Hd, F]
    wz_d = jnp.transpose(Wz[:, 1:], (0, 1, 3, 2))            # [2, K-1, Hd, F]
    wh_d = jnp.transpose(Wh[:, 1:], (0, 1, 3, 2))
    w_diff = jnp.concatenate([wz_d, wh_d], axis=2).astype(jnp.bfloat16)               # [2, K-1, 2Hd, F]
    b_gate = jnp.concatenate([params["b_z"], params["b_h"]]).reshape(2 * Hd, 1).astype(jnp.float32)
    w_lin = params["W_lin"].T.astype(jnp.bfloat16)                                    # [O, Hd]
    b_lin = params["b_lin"].reshape(O, 1).astype(jnp.float32)

    grid = (2, K - 1, n_pad // tile_j)

    flops = (4 * (K - 1) * F * n_pad * n_pad                 # diffusion matmuls (dominant)
             + 8 * (K - 1) * Hd * F * n_pad + 4 * Hd * F * n_pad   # gate accumulation
             + 2 * O * Hd * n_pad)                           # final Linear
    p_reads = (1 if tile_j == n_pad else (K - 1)) * 2 * n_pad * n_pad * 2
    cost = pl.CostEstimate(flops=flops, transcendentals=3 * Hd * n_pad,
                           bytes_accessed=p_reads + F * n_pad * 2 + O * n_pad * 4)

    kernel = functools.partial(_dcrnn_kernel, hidden=Hd, tile_j=tile_j)
    out_t = pl.pallas_call(
        kernel,
        out_shape=jax.ShapeDtypeStruct((O, n_pad), jnp.float32),
        grid=grid,
        in_specs=[
            pl.BlockSpec((F, n_pad), lambda d, kk, j: (0, 0)),                    # X^T (resident)
            pl.BlockSpec((None, n_pad, tile_j), lambda d, kk, j: (d, 0, j)),      # P_d^T column block
            pl.BlockSpec((2 * Hd, F), lambda d, kk, j: (0, 0)),                   # order-0 gate W
            pl.BlockSpec((None, None, 2 * Hd, F), lambda d, kk, j: (d, kk, 0, 0)),# per-(d,k) gate W
            pl.BlockSpec((2 * Hd, 1), lambda d, kk, j: (0, 0)),                   # gate bias
            pl.BlockSpec((O, Hd), lambda d, kk, j: (0, 0)),                       # Linear weight^T
            pl.BlockSpec((O, 1), lambda d, kk, j: (0, 0)),                        # Linear bias
        ],
        out_specs=pl.BlockSpec((O, tile_j), lambda d, kk, j: (0, j)),
        scratch_shapes=[pltpu.VMEM((2, F, n_pad), jnp.float32),                   # Chebyshev state
                        pltpu.VMEM((2 * Hd, n_pad), jnp.float32)],                # gate accumulator
        compiler_params=pltpu.CompilerParams(
            dimension_semantics=("arbitrary", "arbitrary", "arbitrary"),
            vmem_limit_bytes=vmem_limit),
        cost_estimate=cost,
    )(x_t, p_t, wx, w_diff, b_gate, w_lin, b_lin)

    return out_t[:, :N].T                                    # [N, O]


def recurrent_gcn_forward(x, edge_index, edge_weight, params, K):
    """Public wrapper: pick padding / tiling / VMEM budget, then run the fused kernel."""
    assert K >= 2, "kernel assumes at least one diffusion step (K >= 2)"
    N, F = x.shape
    Hd = params["b_z"].shape[-1]
    O = params["b_lin"].shape[-1]

    cap = _vmem_capacity_bytes()
    budget = int(0.75 * cap)

    n128 = ((N + 127) // 128) * 128
    if _kernel_vmem_bytes(n128, n128, F, Hd, O, K) <= budget:
        # Whole P^T operators are VMEM-resident: each direction is DMA'd exactly once.
        n_pad, tile_j = n128, n128
    else:
        # Stream P^T in column blocks: DMA/compute overlap, no VMEM ceiling on N
        # (at the cost of re-reading P (K-1) times).
        tile_j = 512
        while tile_j > 128 and _kernel_vmem_bytes(
                ((N + tile_j - 1) // tile_j) * tile_j, tile_j, F, Hd, O, K) > budget:
            tile_j -= 128
        n_pad = ((N + tile_j - 1) // tile_j) * tile_j

    vmem_limit = int(min(cap, max(32 * 1024 * 1024,
                                  _kernel_vmem_bytes(n_pad, tile_j, F, Hd, O, K) + (4 << 20))))

    return _recurrent_gcn_impl(x, edge_index, edge_weight, params,
                               K=K, n_pad=n_pad, tile_j=tile_j, vmem_limit=vmem_limit)


def recurrent_gcn_reference(x, edge_index, edge_weight, params, K):
    """Pure-JAX f32 reference (general DCRNN with explicit concat, H0 = 0)."""
    N, F = x.shape
    Hd = params["b_z"].shape[-1]
    A = jnp.zeros((N, N), jnp.float32).at[edge_index[0], edge_index[1]].add(edge_weight)
    deg_out = jnp.where(A.sum(axis=1) > 0, A.sum(axis=1), 1.0)
    deg_in = jnp.where(A.sum(axis=0) > 0, A.sum(axis=0), 1.0)
    P_out = A * (1.0 / deg_out)[:, None]
    P_in = A.T * (1.0 / deg_in)[:, None]

    def dconv(XH, W, b):
        acc = XH @ W[0, 0] + XH @ W[1, 0]
        for d, P in enumerate((P_out, P_in)):
            T0, T1 = XH, P @ XH
            if K > 1:
                acc += T1 @ W[d, 1]
            for k in range(2, K):
                T2 = 2.0 * (P @ T1) - T0
                acc += T2 @ W[d, k]
                T0, T1 = T1, T2
        return acc + b

    H = jnp.zeros((N, Hd), jnp.float32)
    XH = jnp.concatenate([x, H], axis=-1)
    Z = jax.nn.sigmoid(dconv(XH, params["W_z"], params["b_z"]))
    R = jax.nn.sigmoid(dconv(XH, params["W_r"], params["b_r"]))
    XRH = jnp.concatenate([x, R * H], axis=-1)
    Ht = jnp.tanh(dconv(XRH, params["W_h"], params["b_h"]))
    Hn = Z * H + (1.0 - Z) * Ht
    s = SELU_SCALE * jnp.where(Hn > 0, Hn, SELU_ALPHA * (jnp.exp(Hn) - 1.0))
    return s @ params["W_lin"] + params["b_lin"]


if __name__ == "__main__":
    # Small, deterministic problem.
    N, F, Hd, O, K = 16, 4, 32, 8, 3

    key = jax.random.PRNGKey(0)
    keys = jax.random.split(key, 12)

    # Node features.
    x = jax.random.normal(keys[0], (N, F), dtype=jnp.float32)

    # Bidirectional ring graph (every node has in/out degree > 0).
    idx = jnp.arange(N)
    src = jnp.concatenate([idx, (idx + 1) % N])
    dst = jnp.concatenate([(idx + 1) % N, idx])
    edge_index = jnp.stack([src, dst]).astype(jnp.int32)          # [2, 2N]
    edge_weight = jax.random.uniform(keys[1], (2 * N,), jnp.float32, 0.5, 1.5)

    # Deterministic synthetic parameters (shapes follow DCRNN(F, Hd, K) + Linear(Hd, O)).
    # W_lin is stored pre-transposed as [Hd, O].
    def nrm(k, shape, scale=0.1):
        return scale * jax.random.normal(k, shape, dtype=jnp.float32)

    params = {
        "W_z": nrm(keys[2], (2, K, F + Hd, Hd)),
        "b_z": nrm(keys[3], (Hd,)),
        "W_r": nrm(keys[4], (2, K, F + Hd, Hd)),
        "b_r": nrm(keys[5], (Hd,)),
        "W_h": nrm(keys[6], (2, K, F + Hd, Hd)),
        "b_h": nrm(keys[7], (Hd,)),
        "W_lin": nrm(keys[8], (Hd, O)),
        "b_lin": nrm(keys[9], (O,)),
    }

    out = recurrent_gcn_forward(x, edge_index, edge_weight, params, K)
    out = jax.block_until_ready(out)

    ref = recurrent_gcn_reference(x, edge_index, edge_weight, params, K)
    assert out.shape == (N, O)
    # Tolerance reflects bf16 MXU operands (f32 accumulation); pure-f32 reference is truth.
    assert jnp.allclose(out, ref, atol=3e-2, rtol=3e-2), "mismatch vs JAX reference"

    print("KERNEL_OK")
</pallas_src>

<mosaic_0001>
module attributes {stable_mosaic.version = 11 : i64} {
  func.func private @main(%arg0: i32) attributes {dimension_semantics = [#tpu.dimension_semantics<core_parallel>], iteration_bounds = array<i64: 2>, tpu.core_type = #tpu.core_type<sc_scalar_subcore>, window_params = []} {
    return
  }
}

module attributes {stable_mosaic.version = 11 : i64} {
  func.func private @main(%arg0: i32) attributes {dimension_semantics = [#tpu.dimension_semantics<core_parallel>], iteration_bounds = array<i64: 2>, tpu.core_type = #tpu.core_type<sc_scalar_subcore>, window_params = []} {
    return
  }
}

module attributes {stable_mosaic.version = 11 : i64} {
  func.func @_dcrnn_kernel(%arg0: i32, %arg1: i32, %arg2: i32, %arg3: memref<4x128xbf16, #tpu.memory_space<vmem>>, %arg4: memref<1x128x128xbf16, #tpu.memory_space<vmem>>, %arg5: memref<64x4xbf16, #tpu.memory_space<vmem>>, %arg6: memref<1x1x64x4xbf16, #tpu.memory_space<vmem>>, %arg7: memref<64x1xf32, #tpu.memory_space<vmem>>, %arg8: memref<8x32xbf16, #tpu.memory_space<vmem>>, %arg9: memref<8x1xf32, #tpu.memory_space<vmem>>, %arg10: memref<8x128xf32, #tpu.memory_space<vmem>>, %arg11: memref<2x4x128xf32, #tpu.memory_space<vmem>>, %arg12: memref<64x128xf32, #tpu.memory_space<vmem>>) attributes {dimension_semantics = [#tpu.dimension_semantics<arbitrary>, #tpu.dimension_semantics<arbitrary>, #tpu.dimension_semantics<arbitrary>], iteration_bounds = array<i64: 2, 2, 1>, scalar_prefetch = 0 : i64, scratch_operands = 2 : i64, tpu.core_type = #tpu.core_type<tc>, window_params = [{pipeline_mode = #tpu.pipeline_mode<synchronous>, transform_indices = @transform_0, window_bounds = array<i64: 4, 128>}, {transform_indices = @transform_1, window_bounds = array<i64: 1, 128, 128>}, {pipeline_mode = #tpu.pipeline_mode<synchronous>, transform_indices = @transform_2, window_bounds = array<i64: 64, 4>}, {transform_indices = @transform_3, window_bounds = array<i64: 1, 1, 64, 4>}, {pipeline_mode = #tpu.pipeline_mode<synchronous>, transform_indices = @transform_4, window_bounds = array<i64: 64, 1>}, {pipeline_mode = #tpu.pipeline_mode<synchronous>, transform_indices = @transform_5, window_bounds = array<i64: 8, 32>}, {pipeline_mode = #tpu.pipeline_mode<synchronous>, transform_indices = @transform_6, window_bounds = array<i64: 8, 1>}, {transform_indices = @transform_7, window_bounds = array<i64: 8, 128>}]} {
    %c1_i32 = arith.constant 1 : i32
    %0 = arith.addi %arg1, %c1_i32 : i32
    %c128_i32 = arith.constant 128 : i32
    %1 = arith.muli %arg2, %c128_i32 : i32
    %2 = tpu.assume_multiple %1, 128 : i32
    %c0_i32 = arith.constant 0 : i32
    %3 = arith.cmpi eq, %arg1, %c0_i32 : i32
    %c0_i32_0 = arith.constant 0 : i32
    %4 = arith.cmpi eq, %arg2, %c0_i32_0 : i32
    %5 = arith.andi %3, %4 : i1
    %6 = arith.extui %5 : i1 to i32
    %c0_i32_1 = arith.constant 0 : i32
    %7 = arith.cmpi ne, %6, %c0_i32_1 : i32
    scf.if %7 {
      %c0_35 = arith.constant 0 : index
      %c0_36 = arith.constant 0 : index
      %69 = vector.load %arg3[%c0_35, %c0_36] : memref<4x128xbf16, #tpu.memory_space<vmem>>, vector<4x128xbf16>
      %70 = arith.extf %69 : vector<4x128xbf16> to vector<4x128xf32>
      %c0_37 = arith.constant 0 : index
      %c0_38 = arith.constant 0 : index
      %c0_39 = arith.constant 0 : index
      %71 = vector.load %arg11[%c0_37, %c0_38, %c0_39] : memref<2x4x128xf32, #tpu.memory_space<vmem>>, vector<1x4x128xf32>
      %72 = vector.shape_cast %71 : vector<1x4x128xf32> to vector<4x128xf32>
      %73 = vector.shape_cast %70 : vector<4x128xf32> to vector<1x4x128xf32>
      tpu.vector_store %arg11[%c0_37, %c0_38, %c0_39], %73 {strides = array<i32>} : memref<2x4x128xf32, #tpu.memory_space<vmem>>, vector<1x4x128xf32>,
      %cst_40 = arith.constant 0.000000e+00 : f32
      %74 = vector.broadcast %cst_40 : f32 to vector<4x128xf32>
      %c1 = arith.constant 1 : index
      %c0_41 = arith.constant 0 : index
      %c0_42 = arith.constant 0 : index
      %75 = vector.load %arg11[%c1, %c0_41, %c0_42] : memref<2x4x128xf32, #tpu.memory_space<vmem>>, vector<1x4x128xf32>
      %76 = vector.shape_cast %75 : vector<1x4x128xf32> to vector<4x128xf32>
      %77 = vector.shape_cast %74 : vector<4x128xf32> to vector<1x4x128xf32>
      tpu.vector_store %arg11[%c1, %c0_41, %c0_42], %77 {strides = array<i32>} : memref<2x4x128xf32, #tpu.memory_space<vmem>>, vector<1x4x128xf32>,
    } else {
    }
    %c2_i32 = arith.constant 2 : i32
    %c0_i32_2 = arith.constant 0 : i32
    %8 = arith.cmpi eq, %c2_i32, %c0_i32_2 : i32
    %c1_i32_3 = arith.constant 1 : i32
    %9 = arith.select %8, %c1_i32_3, %c2_i32 : i32
    %10 = arith.remsi %arg1, %9 : i32
    %c0_i32_4 = arith.constant 0 : i32
    %11 = arith.cmpi ne, %10, %c0_i32_4 : i32
    %c0_i32_5 = arith.constant 0 : i32
    %12 = arith.cmpi slt, %10, %c0_i32_5 : i32
    %c0_i32_6 = arith.constant 0 : i32
    %13 = arith.cmpi slt, %9, %c0_i32_6 : i32
    %14 = arith.xori %12, %13 : i1
    %15 = arith.andi %14, %11 : i1
    %16 = arith.addi %10, %9 : i32
    %17 = arith.select %15, %16, %10 : i32
    %c1_i32_7 = arith.constant 1 : i32
    %18 = arith.addi %arg1, %c1_i32_7 : i32
    %c2_i32_8 = arith.constant 2 : i32
    %c0_i32_9 = arith.constant 0 : i32
    %19 = arith.cmpi eq, %c2_i32_8, %c0_i32_9 : i32
    %c1_i32_10 = arith.constant 1 : i32
    %20 = arith.select %19, %c1_i32_10, %c2_i32_8 : i32
    %21 = arith.remsi %18, %20 : i32
    %c0_i32_11 = arith.constant 0 : i32
    %22 = arith.cmpi ne, %21, %c0_i32_11 : i32
    %c0_i32_12 = arith.constant 0 : i32
    %23 = arith.cmpi slt, %21, %c0_i32_12 : i32
    %c0_i32_13 = arith.constant 0 : i32
    %24 = arith.cmpi slt, %20, %c0_i32_13 : i32
    %25 = arith.xori %23, %24 : i1
    %26 = arith.andi %25, %22 : i1
    %27 = arith.addi %21, %20 : i32
    %28 = arith.select %26, %27, %21 : i32
    %29 = arith.index_cast %17 : i32 to index
    %c0 = arith.constant 0 : index
    %c0_14 = arith.constant 0 : index
    %30 = vector.load %arg11[%29, %c0, %c0_14] : memref<2x4x128xf32, #tpu.memory_space<vmem>>, vector<1x4x128xf32>
    %31 = vector.shape_cast %30 : vector<1x4x128xf32> to vector<4x128xf32>
    %32 = arith.truncf %31 : vector<4x128xf32> to vector<4x128xbf16>
    %c0_15 = arith.constant 0 : index
    %c0_16 = arith.constant 0 : index
    %c0_17 = arith.constant 0 : index
    %33 = vector.load %arg4[%c0_15, %c0_16, %c0_17] : memref<1x128x128xbf16, #tpu.memory_space<vmem>>, vector<1x128x128xbf16>
    %34 = vector.shape_cast %33 : vector<1x128x128xbf16> to vector<128x128xbf16>
    %cst = arith.constant dense<0.000000e+00> : vector<4x128xf32>
    %35 = tpu.matmul %32, %34, %cst {dimension_numbers = #tpu.dot_dimension_numbers<[1], [0], [0], [1], [0, 0, 1, 1], [], []>} : vector<4x128xbf16>, vector<128x128xbf16>, vector<4x128xf32> -> vector<4x128xf32>
    %36 = arith.index_cast %28 : i32 to index
    %c0_18 = arith.constant 0 : index
    %37 = arith.index_cast %2 : i32 to index
    %38 = vector.load %arg11[%36, %c0_18, %37] : memref<2x4x128xf32, #tpu.memory_space<vmem>>, vector<1x4x128xf32>
    %39 = vector.shape_cast %38 : vector<1x4x128xf32> to vector<4x128xf32>
    %c1_i32_19 = arith.constant 1 : i32
    %40 = arith.cmpi eq, %0, %c1_i32_19 : i32
    %cst_20 = arith.constant 2.000000e+00 : f32
    %41 = vector.broadcast %cst_20 : f32 to vector<4x128xf32>
    %42 = arith.mulf %41, %35 : vector<4x128xf32>
    %43 = arith.subf %42, %39 : vector<4x128xf32>
    %44 = arith.select %40, %35, %43 : vector<4x128xf32>
    %45 = arith.index_cast %28 : i32 to index
    %c0_21 = arith.constant 0 : index
    %46 = arith.index_cast %2 : i32 to index
    %47 = vector.load %arg11[%45, %c0_21, %46] : memref<2x4x128xf32, #tpu.memory_space<vmem>>, vector<1x4x128xf32>
    %48 = vector.shape_cast %47 : vector<1x4x128xf32> to vector<4x128xf32>
    %49 = vector.shape_cast %44 : vector<4x128xf32> to vector<1x4x128xf32>
    tpu.vector_store %arg11[%45, %c0_21, %46], %49 {strides = array<i32>} : memref<2x4x128xf32, #tpu.memory_space<vmem>>, vector<1x4x128xf32>,
    %c0_i32_22 = arith.constant 0 : i32
    %50 = arith.cmpi eq, %arg0, %c0_i32_22 : i32
    %c0_i32_23 = arith.constant 0 : i32
    %51 = arith.cmpi eq, %arg1, %c0_i32_23 : i32
    %52 = arith.andi %50, %51 : i1
    %53 = arith.extui %52 : i1 to i32
    %c0_i32_24 = arith.constant 0 : i32
    %54 = arith.cmpi ne, %53, %c0_i32_24 : i32
    scf.if %54 {
      %c0_35 = arith.constant 0 : index
      %c0_36 = arith.constant 0 : index
      %69 = vector.load %arg5[%c0_35, %c0_36] : memref<64x4xbf16, #tpu.memory_space<vmem>>, vector<64x4xbf16>
      %c0_37 = arith.constant 0 : index
      %70 = arith.index_cast %2 : i32 to index
      %71 = vector.load %arg3[%c0_37, %70] : memref<4x128xbf16, #tpu.memory_space<vmem>>, vector<4x128xbf16>
      %cst_38 = arith.constant dense<0.000000e+00> : vector<64x128xf32>
      %72 = tpu.matmul %69, %71, %cst_38 {dimension_numbers = #tpu.dot_dimension_numbers<[1], [0], [0], [1], [0, 0, 1, 1], [], []>} : vector<64x4xbf16>, vector<4x128xbf16>, vector<64x128xf32> -> vector<64x128xf32>
      %c0_39 = arith.constant 0 : index
      %73 = arith.index_cast %2 : i32 to index
      %74 = vector.load %arg12[%c0_39, %73] : memref<64x128xf32, #tpu.memory_space<vmem>>, vector<64x128xf32>
      tpu.vector_store %arg12[%c0_39, %73], %72 {strides = array<i32>} : memref<64x128xf32, #tpu.memory_space<vmem>>, vector<64x128xf32>,
    } else {
    }
    %c0_25 = arith.constant 0 : index
    %55 = arith.index_cast %2 : i32 to index
    %56 = vector.load %arg12[%c0_25, %55] : memref<64x128xf32, #tpu.memory_space<vmem>>, vector<64x128xf32>
    %c0_26 = arith.constant 0 : index
    %c0_27 = arith.constant 0 : index
    %c0_28 = arith.constant 0 : index
    %c0_29 = arith.constant 0 : index
    %57 = vector.load %arg6[%c0_26, %c0_27, %c0_28, %c0_29] : memref<1x1x64x4xbf16, #tpu.memory_space<vmem>>, vector<1x1x64x4xbf16>
    %58 = vector.shape_cast %57 : vector<1x1x64x4xbf16> to vector<64x4xbf16>
    %59 = arith.truncf %44 : vector<4x128xf32> to vector<4x128xbf16>
    %cst_30 = arith.constant dense<0.000000e+00> : vector<64x128xf32>
    %60 = tpu.matmul %58, %59, %cst_30 {dimension_numbers = #tpu.dot_dimension_numbers<[1], [0], [0], [1], [0, 0, 1, 1], [], []>} : vector<64x4xbf16>, vector<4x128xbf16>, vector<64x128xf32> -> vector<64x128xf32>
    %61 = arith.addf %56, %60 : vector<64x128xf32>
    %c0_31 = arith.constant 0 : index
    %62 = arith.index_cast %2 : i32 to index
    %63 = vector.load %arg12[%c0_31, %62] : memref<64x128xf32, #tpu.memory_space<vmem>>, vector<64x128xf32>
    tpu.vector_store %arg12[%c0_31, %62], %61 {strides = array<i32>} : memref<64x128xf32, #tpu.memory_space<vmem>>, vector<64x128xf32>,
    %c1_i32_32 = arith.constant 1 : i32
    %64 = arith.cmpi eq, %arg0, %c1_i32_32 : i32
    %c1_i32_33 = arith.constant 1 : i32
    %65 = arith.cmpi eq, %arg1, %c1_i32_33 : i32
    %66 = arith.andi %64, %65 : i1
    %67 = arith.extui %66 : i1 to i32
    %c0_i32_34 = arith.constant 0 : i32
    %68 = arith.cmpi ne, %67, %c0_i32_34 : i32
    scf.if %68 {
      %c0_35 = arith.constant 0 : index
      %69 = arith.index_cast %2 : i32 to index
      %70 = vector.load %arg12[%c0_35, %69] : memref<64x128xf32, #tpu.memory_space<vmem>>, vector<64x128xf32>
      %c0_36 = arith.constant 0 : index
      %c0_37 = arith.constant 0 : index
      %71 = vector.load %arg7[%c0_36, %c0_37] : memref<64x1xf32, #tpu.memory_space<vmem>>, vector<64x1xf32>
      %72 = vector.broadcast %71 : vector<64x1xf32> to vector<64x128xf32>
      %73 = arith.addf %70, %72 : vector<64x128xf32>
      %74 = vector.extract_strided_slice %73 {offsets = [0, 0], sizes = [32, 128], strides = [1, 1]} : vector<64x128xf32> to vector<32x128xf32>
      %75 = arith.negf %74 : vector<32x128xf32>
      %76 = math.exp %75 : vector<32x128xf32>
      %cst_38 = arith.constant 1.000000e+00 : f32
      %77 = vector.broadcast %cst_38 : f32 to vector<32x128xf32>
      %78 = arith.addf %77, %76 : vector<32x128xf32>
      %79 = arith.divf %77, %78 : vector<32x128xf32>
      %80 = vector.extract_strided_slice %73 {offsets = [32, 0], sizes = [32, 128], strides = [1, 1]} : vector<64x128xf32> to vector<32x128xf32>
      %81 = math.tanh %80 : vector<32x128xf32>
      %cst_39 = arith.constant 1.000000e+00 : f32
      %82 = vector.broadcast %cst_39 : f32 to vector<32x128xf32>
      %83 = arith.subf %82, %79 : vector<32x128xf32>
      %84 = arith.mulf %83, %81 : vector<32x128xf32>
      %cst_40 = arith.constant 0.000000e+00 : f32
      %85 = vector.broadcast %cst_40 : f32 to vector<32x128xf32>
      %86 = arith.cmpf ogt, %84, %85 : vector<32x128xf32>
      %87 = math.exp %84 : vector<32x128xf32>
      %cst_41 = arith.constant 1.000000e+00 : f32
      %88 = vector.broadcast %cst_41 : f32 to vector<32x128xf32>
      %89 = arith.subf %87, %88 : vector<32x128xf32>
      %cst_42 = arith.constant 1.67326319 : f32
      %90 = vector.broadcast %cst_42 : f32 to vector<32x128xf32>
      %91 = arith.mulf %90, %89 : vector<32x128xf32>
      %92 = arith.select %86, %84, %91 : vector<32x128xi1>, vector<32x128xf32>
      %cst_43 = arith.constant 1.05070102 : f32
      %93 = vector.broadcast %cst_43 : f32 to vector<32x128xf32>
      %94 = arith.mulf %93, %92 : vector<32x128xf32>
      %c0_44 = arith.constant 0 : index
      %c0_45 = arith.constant 0 : index
      %95 = vector.load %arg8[%c0_44, %c0_45] : memref<8x32xbf16, #tpu.memory_space<vmem>>, vector<8x32xbf16>
      %96 = arith.truncf %94 : vector<32x128xf32> to vector<32x128xbf16>
      %cst_46 = arith.constant dense<0.000000e+00> : vector<8x128xf32>
      %97 = tpu.matmul %95, %96, %cst_46 {dimension_numbers = #tpu.dot_dimension_numbers<[1], [0], [0], [1], [0, 0, 1, 1], [], []>} : vector<8x32xbf16>, vector<32x128xbf16>, vector<8x128xf32> -> vector<8x128xf32>
      %c0_47 = arith.constant 0 : index
      %c0_48 = arith.constant 0 : index
      %98 = vector.load %arg9[%c0_47, %c0_48] : memref<8x1xf32, #tpu.memory_space<vmem>>, vector<8x1xf32>
      %99 = vector.broadcast %98 : vector<8x1xf32> to vector<8x128xf32>
      %100 = arith.addf %97, %99 : vector<8x128xf32>
      %c0_49 = arith.constant 0 : index
      %c0_50 = arith.constant 0 : index
      %101 = vector.load %arg10[%c0_49, %c0_50] : memref<8x128xf32, #tpu.memory_space<vmem>>, vector<8x128xf32>
      tpu.vector_store %arg10[%c0_49, %c0_50], %100 {strides = array<i32>} : memref<8x128xf32, #tpu.memory_space<vmem>>, vector<8x128xf32>,
    } else {
    }
    return
  }
  func.func @transform_0(%arg0: i32, %arg1: i32, %arg2: i32) -> (i32, i32) {
    %c0_i32 = arith.constant 0 : i32
    %c0_i32_0 = arith.constant 0 : i32
    %c0_i32_1 = arith.constant 0 : i32
    return %c0_i32, %c0_i32_0 : i32, i32
  }
  func.func @transform_1(%arg0: i32, %arg1: i32, %arg2: i32) -> (i32, i32, i32) {
    %c0_i32 = arith.constant 0 : i32
    %c0_i32_0 = arith.constant 0 : i32
    return %arg0, %c0_i32, %arg2 : i32, i32, i32
  }
  func.func @transform_2(%arg0: i32, %arg1: i32, %arg2: i32) -> (i32, i32) {
    %c0_i32 = arith.constant 0 : i32
    %c0_i32_0 = arith.constant 0 : i32
    %c0_i32_1 = arith.constant 0 : i32
    return %c0_i32, %c0_i32_0 : i32, i32
  }
  func.func @transform_3(%arg0: i32, %arg1: i32, %arg2: i32) -> (i32, i32, i32, i32) {
    %c0_i32 = arith.constant 0 : i32
    %c0_i32_0 = arith.constant 0 : i32
    %c0_i32_1 = arith.constant 0 : i32
    return %arg0, %arg1, %c0_i32, %c0_i32_0 : i32, i32, i32, i32
  }
  func.func @transform_4(%arg0: i32, %arg1: i32, %arg2: i32) -> (i32, i32) {
    %c0_i32 = arith.constant 0 : i32
    %c0_i32_0 = arith.constant 0 : i32
    %c0_i32_1 = arith.constant 0 : i32
    return %c0_i32, %c0_i32_0 : i32, i32
  }
  func.func @transform_5(%arg0: i32, %arg1: i32, %arg2: i32) -> (i32, i32) {
    %c0_i32 = arith.constant 0 : i32
    %c0_i32_0 = arith.constant 0 : i32
    %c0_i32_1 = arith.constant 0 : i32
    return %c0_i32, %c0_i32_0 : i32, i32
  }
  func.func @transform_6(%arg0: i32, %arg1: i32, %arg2: i32) -> (i32, i32) {
    %c0_i32 = arith.constant 0 : i32
    %c0_i32_0 = arith.constant 0 : i32
    %c0_i32_1 = arith.constant 0 : i32
    return %c0_i32, %c0_i32_0 : i32, i32
  }
  func.func @transform_7(%arg0: i32, %arg1: i32, %arg2: i32) -> (i32, i32) {
    %c0_i32 = arith.constant 0 : i32
    %c0_i32_0 = arith.constant 0 : i32
    return %c0_i32, %arg2 : i32, i32
  }
}

</mosaic_0001>

<bundles_post_ra>
// kernel: _recurrent_gcn_impl.1
= control target key start
LH: loop header
LB: loop body
LE: loop exit
PB: predicated region body
PF: predicated region fallthrough
CT: control target
= control target key end

     0   :  { %s1369_s24 = smov 0   ;;  %s1371_s25 = smov 0   ;;  %s1528_s0 = inlined_call_operand.vmem [shape: bf16[4,128], index: 0, kind: input, shape index: {}]   ;;  %s1529_s1 = inlined_call_operand.vmem [shape: bf16[2,128,128], index: 1, kind: input, shape index: {}]   ;;  %s1530_s2 = inlined_call_operand.vmem [shape: bf16[64,4], index: 2, kind: input, shape index: {}]   ;;  %s1531_s3 = inlined_call_operand.vmem [shape: bf16[2,2,64,4], index: 3, kind: input, shape index: {}]   ;;  %s1532_s4 = inlined_call_operand.vmem [shape: f32[64,1], index: 4, kind: input, shape index: {}]   ;;  %s1533_s5 = inlined_call_operand.vmem [shape: bf16[8,32], index: 5, kind: input, shape index: {}]   ;;  %s1534_s6 = inlined_call_operand.vmem [shape: f32[8,1], index: 6, kind: input, shape index: {}]   ;;  %s1535_s7 = inlined_call_operand.vmem [shape: f32[8,128], index: 7, kind: output, shape index: {}]  }
   0x1   :  { %s1373_s26 = smov 0   ;;  %s1375_s27 = smov 0  }
   0x2   :  { %s1377_s28 = smov 0  }
   0x3 LB: > { %s32_s29 = sadd.s32 1, %s1313_s26  ;;  %s36_s30 = sadd.s32 1, %s1317_s27  ;;  %s1321_s28 = sphi %s1377_s28, %s17_s28   ;;  %s1317_s27 = sphi %s1375_s27, %s1541_s27   ;;  %s1313_s26 = sphi %s1373_s26, %s1540_s26   ;;  %s1309_s25 = sphi %s1371_s25, %s1539_s25   ;;  %s1305_s24 = sphi %s1369_s24, %s1538_s24  }
   0x4   : > { %p34_p0 = scmp.ge.s32.totalorder %s32_s29, 2  ;;  %p1056_p1 = scmp.ge.s32.totalorder %s1321_s28, 1 }
   0x5   : > { %p277_p2 = scmp.lt.s32.totalorder %s1321_s28, 5 }
   0x6   : > { %s1543_s29 = smov (%p34_p0, %s32_s29), 0  ;;  %s1545_s30 = smov (!%p34_p0, %s36_s30), %s1317_s27 }
   0x7   : > { %p278_p3 = pnand %p1056_p1, %p277_p2  ;;  %p38_p4 = scmp.ge.s32.totalorder %s1545_s30, 2 }
   0x8   : > { %p320_p5 = scmp.lt.s32.totalorder (!%p278_p3), %s1309_s25, 1  ;;  %p330_p6 = scmp.lt.s32.totalorder (!%p278_p3), %s1305_s24, 1 }
   0x9   : > { %s1547_s30 = smov (%p38_p4, %s1545_s30), 0  ;;  %281 = sbr.rel (%p278_p3) target bundleno = 999 (0x3e7), region = 48 }
   0xa   : > { %s1406_s8 = sadd.s32 (!%p278_p3), 1, %s1305_s24  ;;  %p344_p7 = scmp.eq.s32.totalorder (!%p278_p3), %s1305_s24, 0 }
  0x10   : > { %s321_s9 = scalar_select %p320_p5, %s1309_s25, 1 }
  0x11   : > { %s331_s10 = scalar_select %p330_p6, %s1305_s24, 1 }
  0x12   : > { %s1107_s11 = sshll.u32 %s321_s9, 6  ;;  %s1060_s12 = sshll.u32 %s321_s9, 4  ;;  %v350_v0 = vld [vmem:[%s1528_s0] sm:$0x3] (%p344_p7)  ;;  %v1323_v2 = vmov (%p344_p7), 0.0  }
  0x13   : > { %s1414_s15 = scalar_lea.vmem %s1529_s1, %s1107_s11  ;;  %s1059_s16 = sshll.u32 %s331_s10, 3  ;;  %v351_v1 = vunpack.c.l.bf16 (%p344_p7), %v350_v0  ;;  %354 = vst [vmem:[#allocation2 + $0x4] sm:$0xf] (%p344_p7), %v1323_v2 }
  0x14   : > { %s334_s17 = sadd.s32 %s1060_s12, %s1059_s16  ;;  %349 = sbr.rel (!%p344_p7) target bundleno = 27 (0x1b), region = 52 }
  0x15   : > { %s1061_s18 = sshll.u32 %s334_s17, 2  ;;  %352 = vst [vmem:[#allocation2] sm:$0xf] (%p344_p7), %v351_v1 }
  0x16   : > { %s1419_s21 = scalar_lea.vmem %s1531_s3, %s1061_s18 }
  0x1b PF: > { %v1233_v3 = vld [vmem:[%s1414_s15] sm:$0xff]   ;;  %v1324_v4 = vmov 0.0   ;;  %v1234_v5 = vld [vmem:[%s1414_s15 + $0x8] sm:$0xff]   ;;  %vm1325_vm0 = vmmov 0   ;;  %s356_s9 = ssub.s32 0, %s1305_s24  ;;  %p355_p8 = scmp.lt.s32.totalorder %s1305_s24, 0 }
  0x1c   : > { %1131 = vmatprep.subr.bf16.mxu0 %v1324_v4  ;;  %1147 = vmatprep.mubr.msk.bf16.mxu0 %vm1325_vm0, %v1324_v4  ;;  %s1063_s10 = smin.u32 %s1305_s24, %s356_s9  ;;  %v1235_v6 = vld [vmem:[%s1414_s15 + $0x10] sm:$0xff]   ;;  %v1236_v7 = vld [vmem:[%s1414_s15 + $0x18] sm:$0xff]   ;;  %v1237_v8 = vld [vmem:[%s1414_s15 + $0x20] sm:$0xff]   ;;  %p501_p10 = scmp.eq.s32.totalorder %s1309_s25, 0 }
  0x1d   : > { %1132 = vmatpush3.bf16.msra.mxu0 %v1233_v3  ;;  %s358_s11 = sand.u32 1, %s1063_s10   ;;  %v1238_v9 = vld [vmem:[%s1414_s15 + $0x28] sm:$0xff]   ;;  %v1239_v10 = vld [vmem:[%s1414_s15 + $0x30] sm:$0xff]   ;;  %v1240_v11 = vld [vmem:[%s1414_s15 + $0x38] sm:$0xff]   ;;  %s368_s18 = ssub.s32 0, %s1406_s8 }
  0x1e   : > { %1133 = vmatprep.subr.bf16.mxu0 %v1324_v4  ;;  %s359_s12 = ssub.s32 0, %s358_s11  ;;  %p1440_p11 = pnand %p501_p10, %p344_p7 }
  0x1f   : > { %s1549_s12 = smov (!%p355_p8, %s359_s12), %s358_s11  ;;  %s1066_s19 = smin.u32 %s368_s18, %s1406_s8  ;;  %v516_v23 = vld [vmem:[%s1528_s0] sm:$0x3] (!%p1440_p11)  ;;  %vm550_vm2 = vcmask (!%p1440_p11), 1041408   ;;  %vm537_vm3 = vcmask (!%p1440_p11), 31744   ;;  %v1242_v26 = vld [vmem:[%s1530_s2 + $0x10] sm:$0xff] (!%p1440_p11)   ;;  %v1243_v27 = vld [vmem:[%s1530_s2 + $0x8] sm:$0xff] (!%p1440_p11)  }
  0x20   : > { %p1065_p9 = scmp.lt.s32.totalorder %s1549_s12, 0  ;;  %s365_s13 = sadd.s32 2, %s1549_s12  ;;  %v1241_v24 = vld [vmem:[%s1530_s2] sm:$0xff] (!%p1440_p11)   ;;  %1184 = vmatprep.subr.msk.bf16.mxu1 (!%p1440_p11), %vm550_vm2, %v516_v23  ;;  %v552_v25 = vsel (!%p1440_p11), %vm550_vm2, %v516_v23, 0  ;;  %1157 = vmatprep.mubr.msk.bf16.mxu1 (!%p1440_p11), %vm537_vm3, %v1242_v26  ;;  %v1244_v28 = vld [vmem:[%s1530_s2 + $0x18] sm:$0xff] (!%p1440_p11)  }
  0x21   : > { %1134 = vmatpush3.bf16.msra.mxu0 %v1234_v5  ;;  %s370_s20 = sand.u32 1, %s1066_s19   ;;  %p367_p12 = scmp.lt.s32.totalorder %s1406_s8, 0  ;;  %1180 = vmatpush3.bf16.msra.mxu1 (!%p1440_p11), %v552_v25 }
  0x22   : > { %1135 = vmatprep.subr.bf16.mxu0 %v1324_v4  ;;  %s1551_s13 = smov (!%p1065_p9, %s365_s13), %s1549_s12  ;;  %s371_s22 = ssub.s32 0, %s370_s20 }
  0x23   : > { %s1069_s14 = sshll.u32 %s1551_s13, 2  ;;  %s1553_s22 = smov (!%p367_p12, %s371_s22), %s370_s20 }
  0x24   : > { %s380_s16 = scalar_lea.vmem [#allocation2], %s1069_s14  ;;  %p1068_p13 = scmp.lt.s32.totalorder %s1553_s22, 0  ;;  %1158 = vmatmul.mubr.msk.bf16.vlgmr.msra.gmra.mrb[0].mxu1 (!%p1440_p11), %vm537_vm3, %v1244_v28 }
  0x25   : > { %1136 = vmatpush3.bf16.msra.mxu0 %v1235_v6  ;;  %v381_v12 = vld [vmem:[%s380_s16] sm:$0xf]  ;;  %s377_s15 = sadd.s32 2, %s1553_s22  ;;  %p493_p0 = scmp.eq.s32.totalorder %s1406_s8, 1 }
  0x26   : > { %1137 = vmatprep.subr.bf16.mxu0 %v1324_v4  ;;  %v382_v13 = vpack.c.bf16 %v381_v12, %v381_v12  ;;  %s1555_s15 = smov (!%p1068_p13, %s377_s15), %s1553_s22 }
  0x27   : > { %s1078_s23 = sshll.u32 %s1555_s15, 2 }
  0x28   : > { %s496_s9 = scalar_select %p493_p0, 1, 0 }
  0x29   : > { %1138 = vmatpush3.bf16.msra.mxu0 %v1236_v7  ;;  %s491_s10 = scalar_lea.vmem [#allocation2], %s1078_s23 }
  0x2a   : > { %1139 = vmatprep.subr.bf16.mxu0 %v1324_v4  ;;  %v497_v14 = vstv %s496_s9  ;;  %v492_v16 = vld [vmem:[%s491_s10] sm:$0xf] }
  0x2b   : > { %vm498_vm1 = vcmp.eq.s32.totalorder %v497_v14, 1 }
  0x2d   : > { %1140 = vmatpush3.bf16.msra.mxu0 %v1237_v8 }
  0x2e   : > { %1141 = vmatprep.subr.bf16.mxu0 %v1324_v4 }
  0x31   : > { %1142 = vmatpush3.bf16.msra.mxu0 %v1238_v9 }
  0x32   : > { %1143 = vmatprep.subr.bf16.mxu0 %v1324_v4 }
  0x35   : > { %1144 = vmatpush3.bf16.msra.mxu0 %v1239_v10 }
  0x36   : > { %1145 = vmatprep.subr.bf16.mxu0 %v1324_v4 }
  0x39   : > { %1146 = vmatpush3.bf16.msra.mxu0 %v1240_v11 }
  0x3a   : > { %1183 = vmatprep.subr.msk.bf16.mxu0 (!%p1440_p11), %vm550_vm2, %v516_v23 }
  0x3c   : > { %1148 = vmatmul.mubr.bf16.vlgmr.msra.gmra.mrb[0].mxu0 %v382_v13 }
  0x3d   : > { %1152 = vmatpush3.bf16.msra.mxu0 (!%p1440_p11), %v552_v25  ;;  %1153 = vmatprep.mubr.msk.bf16.mxu0 (!%p1440_p11), %vm537_vm3, %v1241_v24 }
  0xf7   : > { %v1159_v30 = vpop.f32.mrb[0].mxu1 (!%p1440_p11) }
  0xf8   : > { %626 = vst [vmem:[#allocation3 + $0x30] sm:$0xff] (!%p1440_p11), %v1159_v30  ;;  %v604_v32 = vpop.f32.mrb[1].mxu1 (!%p1440_p11) }
  0xf9   : > { %624 = vst [vmem:[#allocation3 + $0x20] sm:$0xff] (!%p1440_p11), %v604_v32  ;;  %v1160_v34 = vpop.f32.mrb[2].mxu1 (!%p1440_p11) }
  0xfa   : > { %627 = vst [vmem:[#allocation3 + $0x38] sm:$0xff] (!%p1440_p11), %v1160_v34  ;;  %v607_v36 = vpop.f32.mrb[3].mxu1 (!%p1440_p11) }
  0xfb   : > { %625 = vst [vmem:[#allocation3 + $0x28] sm:$0xff] (!%p1440_p11), %v607_v36 }
 0x10f   : > { %v481_v15 = vpop.f32.mrb[0].mxu0  ;;  %505 = sbr.rel (%p1440_p11) target bundleno = 490 (0x1ea), region = 56 }
 0x110   : > { %v494_v17 = vmul.f32 2.0, %v481_v15  ;;  %v1149_v18 = vpop.f32.mrb[1].mxu0 }
 0x111   : > { %v484_v19 = vpop.f32.mrb[2].mxu0 }
 0x112   : > { %v495_v20 = vsub.f32 %v494_v17, %v492_v16  ;;  %v1150_v21 = vpop.f32.mrb[3].mxu0  ;;  %1154 = vmatmul.mubr.msk.bf16.vlgmr.msra.gmra.mrb[0].mxu0 (!%p1440_p11), %vm537_vm3, %v1243_v27 }
 0x114   : > { %v499_v22 = vsel %vm498_vm1, %v481_v15, %v495_v20 }
 0x115   : > { %500 = vst [vmem:[%s491_s10] sm:$0xf] %v499_v22 }
 0x1e5   : > { %v1155_v29 = vpop.f32.mrb[0].mxu0 }
 0x1e6   : > { %622 = vst [vmem:[#allocation3 + $0x10] sm:$0xff] %v1155_v29  ;;  %v588_v31 = vpop.f32.mrb[1].mxu0 }
 0x1e7   : > { %620 = vst [vmem:[#allocation3] sm:$0xff] %v588_v31  ;;  %v1156_v33 = vpop.f32.mrb[2].mxu0 }
 0x1e8   : > { %623 = vst [vmem:[#allocation3 + $0x18] sm:$0xff] %v1156_v33  ;;  %v591_v35 = vpop.f32.mrb[3].mxu0 }
 0x1e9   : > { %621 = vst [vmem:[#allocation3 + $0x8] sm:$0xff] %v591_v35 }
 0x1ea PF: > { %v645_v37 = vpack.c.bf16 %v499_v22, %v499_v22  ;;  %vm679_vm4 = vcmask 1041408   ;;  %v1245_v38 = vld [vmem:[%s1419_s21] sm:$0xff]   ;;  %vm666_vm5 = vcmask 31744   ;;  %v1246_v39 = vld [vmem:[%s1419_s21 + $0x10] sm:$0xff]   ;;  %v1247_v41 = vld [vmem:[%s1419_s21 + $0x8] sm:$0xff]   ;;  %p764_p1 = scmp.eq.s32.totalorder %s1309_s25, 1 }
 0x1eb   : > { %v1248_v42 = vld [vmem:[%s1419_s21 + $0x18] sm:$0xff]   ;;  %1163 = vmatprep.mubr.msk.bf16.mxu0 %vm666_vm5, %v1245_v38  ;;  %1167 = vmatprep.mubr.msk.bf16.mxu1 %vm666_vm5, %v1246_v39  ;;  %p765_p2 = scmp.eq.s32.totalorder %s1305_s24, 1  ;;  %v633_v46 = vld [vmem:[#allocation3 + $0x20] sm:$0xff]  ;;  %v636_v50 = vld [vmem:[#allocation3 + $0x38] sm:$0xff] }
 0x1ec   : > { %1185 = vmatprep.subr.msk.bf16.mxu0 %vm679_vm4, %v645_v37  ;;  %1186 = vmatprep.subr.msk.bf16.mxu1 %vm679_vm4, %v645_v37  ;;  %v681_v40 = vsel %vm679_vm4, %v645_v37, 0  ;;  %v635_v44 = vld [vmem:[#allocation3 + $0x30] sm:$0xff]  ;;  %v634_v56 = vld [vmem:[#allocation3 + $0x28] sm:$0xff] }
 0x1ed   : > { %1162 = vmatpush3.bf16.msra.mxu0 %v681_v40  ;;  %1182 = vmatpush3.bf16.msra.mxu1 %v681_v40  ;;  %p1471_p3 = pnand %p765_p2, %p764_p1  ;;  %v631_v43 = vld [vmem:[#allocation3 + $0x10] sm:$0xff] }
 0x1ee   : > { %v629_v45 = vld [vmem:[#allocation3] sm:$0xff]  ;;  %v780_v3 = vld [vmem:[%s1532_s4 + $0x10] sm:$0xff] (!%p1471_p3)  ;;  %v778_v4 = vld [vmem:[%s1532_s4] sm:$0xff] (!%p1471_p3)  ;;  %v1326_v5 = vmov (!%p1471_p3), 0   ;;  %v1327_v13 = vmov (!%p1471_p3), 0.0   ;;  %vm1328_vm6 = vmmov (!%p1471_p3), 0  }
 0x1ef   : > { %v632_v49 = vld [vmem:[#allocation3 + $0x18] sm:$0xff]  ;;  %1250 = vset.pattern.permute.xlu1 (!%p1471_p3), %v1326_v5  ;;  %1249 = vset.pattern.permute.xlu0 (!%p1471_p3), %v1326_v5  ;;  %v781_v6 = vld [vmem:[%s1532_s4 + $0x18] sm:$0xff] (!%p1471_p3)  ;;  %v779_v7 = vld [vmem:[%s1532_s4 + $0x8] sm:$0xff] (!%p1471_p3)  ;;  %vm907_vm11 = vcmask (!%p1471_p3), 261120  }
 0x1f0   : > { %1164 = vmatmul.mubr.msk.bf16.vlgmr.msra.gmra.mrb[0].mxu0 %vm666_vm5, %v1247_v41  ;;  %1168 = vmatmul.mubr.msk.bf16.vlgmr.msra.gmra.mrb[0].mxu1 %vm666_vm5, %v1248_v42  ;;  %v630_v55 = vld [vmem:[#allocation3 + $0x8] sm:$0xff]  ;;  %v783_v8 = vld [vmem:[%s1532_s4 + $0x28] sm:$0xff] (!%p1471_p3)  ;;  %v782_v9 = vld [vmem:[%s1532_s4 + $0x20] sm:$0xff] (!%p1471_p3) }
 0x1f1   : > { %798 = vperm.xlu1 (!%p1471_p3), %1250, %v780_v3   ;;  %788 = vperm.xlu0 (!%p1471_p3), %1249, %v778_v4   ;;  %v785_v10 = vld [vmem:[%s1532_s4 + $0x38] sm:$0xff] (!%p1471_p3)  ;;  %v784_v11 = vld [vmem:[%s1532_s4 + $0x30] sm:$0xff] (!%p1471_p3)  ;;  %v901_v12 = vld [vmem:[%s1534_s6] sm:$0xff] (!%p1471_p3) }
 0x1f2   : > { %1171 = vmatprep.subr.bf16.mxu0 (!%p1471_p3), %v1327_v13  ;;  %1175 = vmatprep.mubr.msk.bf16.mxu0 (!%p1471_p3), %vm1328_vm6, %v1327_v13 }
 0x1f5   : > { %803 = vperm.xlu1 (!%p1471_p3), %1250, %v781_v6   ;;  %793 = vperm.xlu0 (!%p1471_p3), %1249, %v779_v7  }
 0x1f9   : > { %813 = vperm.xlu1 (!%p1471_p3), %1250, %v783_v8   ;;  %808 = vperm.xlu0 (!%p1471_p3), %1249, %v782_v9  }
 0x1fd   : > { %823 = vperm.xlu1 (!%p1471_p3), %1250, %v785_v10   ;;  %818 = vperm.xlu0 (!%p1471_p3), %1249, %v784_v11  }
 0x201   : > { %904 = vperm.xlu0 (!%p1471_p3), %1249, %v901_v12  }
 0x270   : > { %v799_v16 = vpop.permute.xlu1 (!%p1471_p3), %798  ;;  %v789_v17 = vpop.permute.xlu0 (!%p1471_p3), %788 }
 0x274   : > { %v804_v24 = vpop.permute.xlu1 (!%p1471_p3), %803  ;;  %v794_v25 = vpop.permute.xlu0 (!%p1471_p3), %793 }
 0x278   : > { %v809_v30 = vpop.permute.xlu0 (!%p1471_p3), %808  ;;  %v814_v31 = vpop.permute.xlu1 (!%p1471_p3), %813 }
 0x27c   : > { %v819_v32 = vpop.permute.xlu0 (!%p1471_p3), %818  ;;  %v824_v41 = vpop.permute.xlu1 (!%p1471_p3), %823 }
 0x2c3   : > { %v1165_v47 = vpop.f32.mrb[0].mxu0  ;;  %v1169_v48 = vpop.f32.mrb[0].mxu1  ;;  %769 = sbr.rel (%p1471_p3) target bundleno = 999 (0x3e7), region = 60 }
 0x2c4   : > { %v750_v51 = vadd.f32 %v1165_v47, %v631_v43  ;;  %v754_v52 = vadd.f32 %v1169_v48, %v635_v44  ;;  %v717_v53 = vpop.f32.mrb[1].mxu0  ;;  %v733_v54 = vpop.f32.mrb[1].mxu1 }
 0x2c5   : > { %v748_v57 = vadd.f32 %v717_v53, %v629_v45  ;;  %v752_v58 = vadd.f32 %v733_v54, %v633_v46  ;;  %v1166_v59 = vpop.f32.mrb[2].mxu0  ;;  %v1170_v60 = vpop.f32.mrb[2].mxu1 }
 0x2c6   : > { %758 = vst [vmem:[#allocation3 + $0x10] sm:$0xff] %v750_v51  ;;  %762 = vst [vmem:[#allocation3 + $0x30] sm:$0xff] %v754_v52  ;;  %v751_v61 = vadd.f32 %v1166_v59, %v632_v49  ;;  %v755_v62 = vadd.f32 %v1170_v60, %v636_v50  ;;  %v720_v63 = vpop.f32.mrb[3].mxu0  ;;  %v736_v0 = vpop.f32.mrb[3].mxu1 }
 0x2c7   : > { %756 = vst [vmem:[#allocation3] sm:$0xff] %v748_v57  ;;  %760 = vst [vmem:[#allocation3 + $0x20] sm:$0xff] %v752_v58  ;;  %v749_v1 = vadd.f32 %v720_v63, %v630_v55  ;;  %v753_v2 = vadd.f32 %v736_v0, %v634_v56 }
 0x2c8   : > { %759 = vst [vmem:[#allocation3 + $0x18] sm:$0xff] %v751_v61  ;;  %763 = vst [vmem:[#allocation3 + $0x38] sm:$0xff] %v755_v62 }
 0x2c9   : > { %757 = vst [vmem:[#allocation3 + $0x8] sm:$0xff] %v749_v1  ;;  %761 = vst [vmem:[#allocation3 + $0x28] sm:$0xff] %v753_v2 }
 0x2cd   : > { %v772_v14 = vld [vmem:[#allocation3 + $0x10] sm:$0xff] }
 0x2ce   : > { %v770_v15 = vld [vmem:[#allocation3] sm:$0xff]  ;;  %v828_v18 = vadd.f32 %v799_v16, %v772_v14  ;;  %v776_v33 = vld [vmem:[#allocation3 + $0x30] sm:$0xff] }
 0x2cf   : > { %v826_v19 = vadd.f32 %v789_v17, %v770_v15  ;;  %v773_v20 = vld [vmem:[#allocation3 + $0x18] sm:$0xff]  ;;  %v774_v34 = vld [vmem:[#allocation3 + $0x20] sm:$0xff]  ;;  %v832_v38 = vadd.f32 %v819_v32, %v776_v33 }
 0x2d0   : > { %v771_v21 = vld [vmem:[#allocation3 + $0x8] sm:$0xff]  ;;  %v1097_v22 = vmul.f32 -1.442695, %v828_v18  ;;  %v829_v26 = vadd.f32 %v804_v24, %v773_v20  ;;  %v830_v40 = vadd.f32 %v809_v30, %v774_v34  ;;  %v777_v42 = vld [vmem:[#allocation3 + $0x38] sm:$0xff]  ;;  %v905_v30 = vpop.permute.xlu0 %904 }
 0x2d1   : > { %v1095_v23 = vmul.f32 -1.442695, %v826_v19  ;;  %v827_v27 = vadd.f32 %v794_v25, %v771_v21  ;;  %v775_v43 = vld [vmem:[#allocation3 + $0x28] sm:$0xff]  ;;  %v833_v47 = vadd.f32 %v824_v41, %v777_v42 }
 0x2d2   : > { %1251 = vpow2.f32 %v1097_v22  ;;  %v1098_v28 = vmul.f32 -1.442695, %v829_v26  ;;  %v831_v49 = vadd.f32 %v814_v31, %v775_v43 }
 0x2d3   : > { %1253 = vpow2.f32 %v1095_v23  ;;  %v1096_v29 = vmul.f32 -1.442695, %v827_v27 }
 0x2d4   : > { %1255 = vpow2.f32 %v1098_v28 }
 0x2d5   : > { %1257 = vpow2.f32 %v1096_v29  ;;  %v898_v29 = vld [vmem:[%s1533_s5] sm:$0xf] }
 0x2dc   : > { %v1252_v35 = vpop.eup %1251 }
 0x2dd   : > { %v1254_v36 = vpop.eup %1253  ;;  %v848_v37 = vadd.f32 1.0, %v1252_v35 }
 0x2de   : > { %v846_v39 = vadd.f32 1.0, %v1254_v36  ;;  %v1256_v44 = vpop.eup %1255 }
 0x2df   : > { %1259 = vrcp.f32 %v848_v37  ;;  %v1258_v45 = vpop.eup %1257  ;;  %v849_v46 = vadd.f32 1.0, %v1256_v44 }
 0x2e0   : > { %1261 = vrcp.f32 %v846_v39  ;;  %v847_v48 = vadd.f32 1.0, %v1258_v45 }
 0x2e1   : > { %1263 = vtanh.f32 %v832_v38 }
 0x2e2   : > { %1265 = vtanh.f32 %v830_v40 }
 0x2e3   : > { %1267 = vrcp.f32 %v849_v46 }
 0x2e4   : > { %1269 = vrcp.f32 %v847_v48 }
 0x2e5   : > { %1271 = vtanh.f32 %v833_v47 }
 0x2e6   : > { %1273 = vtanh.f32 %v831_v49 }
 0x2e9   : > { %v1260_v50 = vpop.eup %1259 }
 0x2ea   : > { %v1262_v51 = vpop.eup %1261  ;;  %v864_v52 = vsub.f32 1.0, %v1260_v50 }
 0x2eb   : > { %v1264_v53 = vpop.eup %1263  ;;  %v862_v54 = vsub.f32 1.0, %v1262_v51 }
 0x2ec   : > { %v1266_v55 = vpop.eup %1265  ;;  %v868_v56 = vmul.f32 %v1264_v53, %v864_v52 }
 0x2ed   : > { %v1268_v57 = vpop.eup %1267  ;;  %v866_v58 = vmul.f32 %v1266_v55, %v862_v54 }
 0x2ee   : > { %v1270_v59 = vpop.eup %1269  ;;  %v865_v60 = vsub.f32 1.0, %v1268_v57  ;;  %v878_v61 = vmul.f32 1.442695, %v868_v56  ;;  %vm872_vm10 = vcmp.gt.f32.partialorder %v868_v56, 0.0 }
 0x2ef   : > { %v1272_v62 = vpop.eup %1271  ;;  %v863_v63 = vsub.f32 1.0, %v1270_v59  ;;  %v874_v0 = vmul.f32 1.442695, %v866_v58  ;;  %vm870_vm7 = vcmp.gt.f32.partialorder %v866_v58, 0.0 }
 0x2f0   : > { %v1274_v1 = vpop.eup %1273  ;;  %v869_v2 = vmul.f32 %v1272_v62, %v865_v60  ;;  %1275 = vpow2.f32 %v878_v61 }
 0x2f1   : > { %v867_v3 = vmul.f32 %v1274_v1, %v863_v63  ;;  %1277 = vpow2.f32 %v874_v0 }
 0x2f2   : > { %v880_v4 = vmul.f32 1.442695, %v869_v2  ;;  %vm873_vm9 = vcmp.gt.f32.partialorder %v869_v2, 0.0 }
 0x2f3   : > { %v876_v5 = vmul.f32 1.442695, %v867_v3  ;;  %vm871_vm8 = vcmp.gt.f32.partialorder %v867_v3, 0.0 }
 0x2f4   : > { %1279 = vpow2.f32 %v880_v4 }
 0x2f5   : > { %1281 = vpow2.f32 %v876_v5 }
 0x2fa   : > { %v1276_v6 = vpop.eup %1275 }
 0x2fb   : > { %v1278_v7 = vpop.eup %1277  ;;  %v1101_v11 = vadd.f32 -1.0, %v1276_v6 }
 0x2fc   : > { %v1099_v8 = vadd.f32 -1.0, %v1278_v7 }
 0x2fd   : > { %v888_v19 = vmul.f32 1.6732632, %v1101_v11 }
 0x2fe   : > { %v1280_v9 = vpop.eup %1279  ;;  %v886_v10 = vmul.f32 1.6732632, %v1099_v8 }
 0x2ff   : > { %v1282_v12 = vpop.eup %1281  ;;  %v1102_v14 = vadd.f32 -1.0, %v1280_v9  ;;  %v892_v24 = vsel %vm872_vm10, %v868_v56, %v888_v19 }
 0x300   : > { %v1100_v15 = vadd.f32 -1.0, %v1282_v12  ;;  %v890_v18 = vsel %vm870_vm7, %v866_v58, %v886_v10  ;;  %v896_v27 = vmul.f32 1.050701, %v892_v24 }
 0x301   : > { %v889_v16 = vmul.f32 1.6732632, %v1102_v14  ;;  %v894_v22 = vmul.f32 1.050701, %v890_v18 }
 0x302   : > { %v887_v17 = vmul.f32 1.6732632, %v1100_v15 }
 0x303   : > { %v893_v21 = vsel %vm873_vm9, %v869_v2, %v889_v16 }
 0x304   : > { %v891_v20 = vsel %vm871_vm8, %v867_v3, %v887_v17  ;;  %v897_v26 = vmul.f32 1.050701, %v893_v21 }
 0x305   : > { %v895_v23 = vmul.f32 1.050701, %v891_v20 }
 0x306   : > { %v900_v28 = vpack.c.bf16 %v897_v26, %v896_v27 }
 0x307   : > { %v899_v25 = vpack.c.bf16 %v895_v23, %v894_v22 }
 0x309   : > { %1172 = vmatpush3.bf16.msra.mxu0 %v899_v25 }
 0x30a   : > { %1173 = vmatprep.subr.bf16.mxu0 %v1327_v13 }
 0x30d   : > { %1174 = vmatpush3.bf16.msra.mxu0 %v900_v28 }
 0x310   : > { %1176 = vmatmul.mubr.msk.bf16.vlgmr.msra.gmra.mrb[0].mxu0 %vm907_vm11, %v898_v29 }
 0x3e3   : > { %v945_v31 = vpop.f32.mrb[0].mxu0 }
 0x3e4   : > { %v946_v32 = vadd.f32 %v945_v31, %v905_v30  ;;  %v1177_v33 = vpop.f32.mrb[1].mxu0 }
 0x3e5   : > { %v948_v34 = vpop.f32.mrb[2].mxu0 }
 0x3e6   : > { %951 = vst [vmem:[%s1535_s7] sm:$0xff] %v946_v32  ;;  %v1178_v35 = vpop.f32.mrb[3].mxu0 }
 0x3e7 PF: > { %s17_s28 = sadd.s32 1, %s1321_s28   ;;  %s1538_s24 = smov %s1313_s26 }
 0x3e8   : > { %p14_p4 = scmp.ge.s32.totalorder %s17_s28, 6   ;;  %s1539_s25 = smov %s1317_s27 }
 0x3e9   : > { %s1540_s26 = smov %s1543_s29  ;;  %s1541_s27 = smov %s1547_s30 }
 0x3ea   :  { %16 = sbr.rel (!%p14_p4) target bundleno = 3 (0x3), region = 99 }

</bundles_post_ra>
